<compile_context>
chip_gen: v5e
topology: v5e:2x2
jax: 0.10.0
libtpu: 0.0.40
codegen_flags: <defaults>
</compile_context>

<pallas_src>
import math
import functools

import jax
import jax.numpy as jnp
from jax.experimental import pallas as pl
from jax.experimental.pallas import tpu as pltpu


# packed per-layer vector-parameter rows (each padded to WP = max(D, F)):
# 0:bq(pre-scaled) 1:bk 2:bv 3:bo 4:ln1_g 5:ln1_b 6:ffn_b1 7:ffn_b2 8:ln2_g 9:ln2_b
_N_PRM_ROWS = 10


# ----------------------------------------------------------------------------
# Fused Pallas kernel: one grid step == one (batch element, encoder layer)
# ----------------------------------------------------------------------------
def fused_transformer_kernel(x_ref, wqkv_ref, wo_ref, w1_ref, w2_ref,
                             prm_ref, fgb_ref, o_ref, h_ref,
                             *, nhead, head_dim, d_model, d_ff, eps):
    """grid = (B, L); batch axis is "parallel", layer axis is "arbitrary".

    x_ref/o_ref : (1, S, D) f32       h_ref : (S, D) f32 resident activation scratch
    wqkv_ref : (1, D, 3D) bf16  wo_ref : (1, D, D) bf16
    w1_ref   : (1, D, F)  bf16  w2_ref : (1, F, D) bf16
    prm_ref  : (1, 10, max(D, F)) f32  fgb_ref : (2, D) f32 final LN gamma/beta
    """
    layer = pl.program_id(1)
    D, F = d_model, d_ff

    @pl.when(layer == 0)
    def _():
        # positional encoding already added in the wrapper; dropout = identity (eval)
        h_ref[...] = x_ref[0]

    x = h_ref[...]                                      # (S, D) f32
    prm = prm_ref[0]                                    # (10, WP) f32
    wqkv = wqkv_ref[0]                                  # (D, 3D) bf16 (1/sqrt(hd) folded into Q cols)
    wo = wo_ref[0]                                      # (D, D)  bf16

    # ---- fused QKV projection (bf16 MXU inputs, f32 accumulate) --------------
    qkv = jnp.dot(x.astype(jnp.bfloat16), wqkv,
                  preferred_element_type=jnp.float32)   # (S, 3D) f32
    q = qkv[:, 0 * D:1 * D] + prm[0:1, :D]
    k = qkv[:, 1 * D:2 * D] + prm[1:2, :D]
    v = qkv[:, 2 * D:3 * D] + prm[2:3, :D]

    # ---- multi-head attention on per-batch (S, S) scores (no mask needed) ----
    # TODO(synk): 128-unaligned head slices at toy head_dim=8; use >=128 at prod.
    head_outs = []
    for h in range(nhead):                              # static head loop
        sl = slice(h * head_dim, (h + 1) * head_dim)
        qh = q[:, sl].astype(jnp.bfloat16)
        kh = k[:, sl].astype(jnp.bfloat16)
        vh = v[:, sl].astype(jnp.bfloat16)
        # q · kᵀ without materializing a transposed copy (contract last dims)
        s = jax.lax.dot_general(qh, kh, (((1,), (1,)), ((), ())),
                                preferred_element_type=jnp.float32)   # (S, S) f32
        s = s - jnp.max(s, axis=-1, keepdims=True)
        p = jnp.exp(s)
        p = p * pl.reciprocal(jnp.sum(p, axis=-1, keepdims=True), approx=True)
        head_outs.append(jnp.dot(p.astype(jnp.bfloat16), vh,
                                 preferred_element_type=jnp.float32))  # (S, hd)
    concat = jnp.concatenate(head_outs, axis=-1)                       # (S, D)
    attn = jnp.dot(concat.astype(jnp.bfloat16), wo,
                   preferred_element_type=jnp.float32) + prm[3:4, :D]

    # ---- residual + LayerNorm 1 (post-norm), f32 ------------------------------
    h1 = x + attn
    mu1 = jnp.mean(h1, axis=-1, keepdims=True)
    var1 = jnp.mean((h1 - mu1) ** 2, axis=-1, keepdims=True)
    h1n = (h1 - mu1) * jax.lax.rsqrt(var1 + eps) * prm[4:5, :D] + prm[5:6, :D]

    # ---- feed-forward (ReLU, PyTorch default activation) ----------------------
    ff = jnp.dot(h1n.astype(jnp.bfloat16), w1_ref[0],
                 preferred_element_type=jnp.float32) + prm[6:7, :F]
    ff = jnp.maximum(ff, 0.0)
    ff = jnp.dot(ff.astype(jnp.bfloat16), w2_ref[0],
                 preferred_element_type=jnp.float32) + prm[7:8, :D]

    # ---- residual + LayerNorm 2 ----------------------------------------------
    h2 = h1n + ff
    mu2 = jnp.mean(h2, axis=-1, keepdims=True)
    var2 = jnp.mean((h2 - mu2) ** 2, axis=-1, keepdims=True)
    h2n = (h2 - mu2) * jax.lax.rsqrt(var2 + eps) * prm[8:9, :D] + prm[9:10, :D]

    h_ref[...] = h2n                                    # stays resident for the next layer

    # ---- final encoder LayerNorm, written once on the last layer step --------
    @pl.when(layer == pl.num_programs(1) - 1)
    def _():
        mu = jnp.mean(h2n, axis=-1, keepdims=True)
        var = jnp.mean((h2n - mu) ** 2, axis=-1, keepdims=True)
        o_ref[0] = ((h2n - mu) * jax.lax.rsqrt(var + eps)
                    * fgb_ref[0:1, :] + fgb_ref[1:2, :])


# ----------------------------------------------------------------------------
# Wrapper (single pallas_call for the whole forward)
# ----------------------------------------------------------------------------
def transformer_enc_forward(x, params, *, nhead, eps=1e-5):
    """x: (B, S, D) float32 (batch_first). Returns (B, S, D) float32."""
    B, S, D = x.shape
    L = params["wqkv_t"].shape[0]
    F = params["w1_t"].shape[-1]
    WP = params["prm"].shape[-1]
    head_dim = D // nhead

    # PositionalEncoding quirk of the reference module: pe[:x.size(0)] with a
    # batch-first input indexes by *batch* and broadcasts over the sequence dim.
    # Pre-added here (it happens exactly once) to drop a per-step VMEM input.
    x2 = x.astype(jnp.float32) + params["pe"][:B, 0:1, :]

    kernel = functools.partial(fused_transformer_kernel, nhead=nhead,
                               head_dim=head_dim, d_model=D, d_ff=F, eps=eps)

    out = pl.pallas_call(
        kernel,
        out_shape=jax.ShapeDtypeStruct((B, S, D), jnp.float32),
        grid=(B, L),
        in_specs=[
            pl.BlockSpec((1, S, D), lambda b, l: (b, 0, 0)),            # x (+PE), per batch
            pl.BlockSpec((1, D, 3 * D), lambda b, l: (l, 0, 0)),        # W_qkv stacked (bf16)
            pl.BlockSpec((1, D, D), lambda b, l: (l, 0, 0)),            # W_o (bf16)
            pl.BlockSpec((1, D, F), lambda b, l: (l, 0, 0)),            # W_ffn1 (bf16)
            pl.BlockSpec((1, F, D), lambda b, l: (l, 0, 0)),            # W_ffn2 (bf16)
            pl.BlockSpec((1, _N_PRM_ROWS, WP), lambda b, l: (l, 0, 0)), # packed biases / LN (f32)
            pl.BlockSpec((2, D), lambda b, l: (0, 0)),                  # final LN gamma/beta
        ],
        out_specs=pl.BlockSpec((1, S, D), lambda b, l: (b, 0, 0)),
        scratch_shapes=[pltpu.VMEM((S, D), jnp.float32)],
        compiler_params=pltpu.CompilerParams(
            dimension_semantics=("parallel", "arbitrary")),
        # TODO(synk): at production shapes set vmem_limit_bytes and consider
        # pipeline_mode=pl.Buffered(1) on the constant-index inputs.
    )(x2, params["wqkv_t"], params["wo_t"], params["w1_t"], params["w2_t"],
      params["prm"], params["final_gb"])
    return out


# ----------------------------------------------------------------------------
# Parameter init + positional encoding (plain-JAX glue)
# ----------------------------------------------------------------------------
def make_positional_encoding(max_len, d_model):
    pos = jnp.arange(max_len, dtype=jnp.float32)[:, None]
    div = jnp.exp(jnp.arange(0, d_model, 2, dtype=jnp.float32)
                  * (-math.log(10000.0) / d_model))
    pe = jnp.zeros((max_len, 1, d_model), jnp.float32)
    pe = pe.at[:, 0, 0::2].set(jnp.sin(pos * div))
    pe = pe.at[:, 0, 1::2].set(jnp.cos(pos * div))
    return pe


def init_transformer_params(key, num_layers, d_model, dim_ff, nhead, max_len=5000):
    head_dim = d_model // nhead
    scale = 1.0 / math.sqrt(head_dim)
    WP = max(d_model, dim_ff)
    s = 0.02

    def pad(vec):
        return jnp.pad(vec, (0, WP - vec.shape[0]))

    wqkv_l, wo_l, w1_l, w2_l, prm_l = [], [], [], [], []
    for k in jax.random.split(key, num_layers):
        k0, k1, k2, k3 = jax.random.split(k, 4)
        wqkv = jax.random.normal(k0, (3 * d_model, d_model), jnp.float32) * s  # torch in_proj layout
        wo = jax.random.normal(k1, (d_model, d_model), jnp.float32) * s
        w1 = jax.random.normal(k2, (dim_ff, d_model), jnp.float32) * s
        w2 = jax.random.normal(k3, (d_model, dim_ff), jnp.float32) * s
        bq = jnp.zeros((d_model,), jnp.float32)
        bk = jnp.zeros((d_model,), jnp.float32)
        bv = jnp.zeros((d_model,), jnp.float32)
        bo = jnp.zeros((d_model,), jnp.float32)
        bb1 = jnp.zeros((dim_ff,), jnp.float32)
        bb2 = jnp.zeros((d_model,), jnp.float32)
        g1 = jnp.ones((d_model,), jnp.float32)
        be1 = jnp.zeros((d_model,), jnp.float32)
        g2 = jnp.ones((d_model,), jnp.float32)
        be2 = jnp.zeros((d_model,), jnp.float32)

        wqkv_t = wqkv.T                                              # (D, 3D)
        # fold the 1/sqrt(head_dim) attention scale into the Q projection (weight + bias)
        wqkv_t = wqkv_t.at[:, :d_model].multiply(scale)
        bq = bq * scale

        # matmul weights stored in bf16 (MXU-native); bias/LN params stay f32
        wqkv_l.append(wqkv_t.astype(jnp.bfloat16))
        wo_l.append(wo.T.astype(jnp.bfloat16))
        w1_l.append(w1.T.astype(jnp.bfloat16))
        w2_l.append(w2.T.astype(jnp.bfloat16))
        prm_l.append(jnp.stack([pad(bq), pad(bk), pad(bv), pad(bo),
                                pad(g1), pad(be1), pad(bb1), pad(bb2),
                                pad(g2), pad(be2)]))                 # (10, WP) f32

    final_gb = jnp.stack([jnp.ones((d_model,), jnp.float32),
                          jnp.zeros((d_model,), jnp.float32)])       # (2, D)

    return dict(
        wqkv_t=jnp.stack(wqkv_l), wo_t=jnp.stack(wo_l),
        w1_t=jnp.stack(w1_l), w2_t=jnp.stack(w2_l),
        prm=jnp.stack(prm_l), final_gb=final_gb,
        pe=make_positional_encoding(max_len, d_model),
    )


# ----------------------------------------------------------------------------
if __name__ == "__main__":
    num_layers = 2
    d_model = 32
    nhead = 4
    dim_ff = 64
    batch, seq = 2, 8

    key = jax.random.PRNGKey(0)
    k_x, k_p = jax.random.split(key)

    x = jax.random.normal(k_x, (batch, seq, d_model), jnp.float32)
    params = init_transformer_params(k_p, num_layers, d_model, dim_ff, nhead)

    out = transformer_enc_forward(x, params, nhead=nhead, eps=1e-5)
    jax.block_until_ready(out)
    assert out.shape == (batch, seq, d_model)
    print("KERNEL_OK")
</pallas_src>

<mosaic_0001>
module attributes {stable_mosaic.version = 11 : i64} {
  func.func @fused_transformer_kernel(%arg0: i32, %arg1: i32, %arg2: memref<1x8x32xf32, #tpu.memory_space<vmem>>, %arg3: memref<1x32x96xbf16, #tpu.memory_space<vmem>>, %arg4: memref<1x32x32xbf16, #tpu.memory_space<vmem>>, %arg5: memref<1x32x64xbf16, #tpu.memory_space<vmem>>, %arg6: memref<1x64x32xbf16, #tpu.memory_space<vmem>>, %arg7: memref<1x10x64xf32, #tpu.memory_space<vmem>>, %arg8: memref<2x32xf32, #tpu.memory_space<vmem>>, %arg9: memref<1x8x32xf32, #tpu.memory_space<vmem>>, %arg10: memref<8x32xf32, #tpu.memory_space<vmem>>) attributes {dimension_semantics = [#tpu.dimension_semantics<parallel>, #tpu.dimension_semantics<arbitrary>], iteration_bounds = array<i64: 2, 2>, scalar_prefetch = 0 : i64, scratch_operands = 1 : i64, tpu.core_type = #tpu.core_type<tc>, window_params = [{transform_indices = @transform_0, window_bounds = array<i64: 1, 8, 32>}, {transform_indices = @transform_1, window_bounds = array<i64: 1, 32, 96>}, {transform_indices = @transform_2, window_bounds = array<i64: 1, 32, 32>}, {transform_indices = @transform_3, window_bounds = array<i64: 1, 32, 64>}, {transform_indices = @transform_4, window_bounds = array<i64: 1, 64, 32>}, {transform_indices = @transform_5, window_bounds = array<i64: 1, 10, 64>}, {pipeline_mode = #tpu.pipeline_mode<synchronous>, transform_indices = @transform_6, window_bounds = array<i64: 2, 32>}, {transform_indices = @transform_7, window_bounds = array<i64: 1, 8, 32>}]} {
    %c0_i32 = arith.constant 0 : i32
    %0 = arith.cmpi eq, %arg1, %c0_i32 : i32
    %1 = arith.extui %0 : i1 to i32
    %c0_i32_0 = arith.constant 0 : i32
    %2 = arith.cmpi ne, %1, %c0_i32_0 : i32
    scf.if %2 {
      %c0_50 = arith.constant 0 : index
      %c0_51 = arith.constant 0 : index
      %c0_52 = arith.constant 0 : index
      %176 = vector.load %arg2[%c0_50, %c0_51, %c0_52] : memref<1x8x32xf32, #tpu.memory_space<vmem>>, vector<1x8x32xf32>
      %177 = vector.shape_cast %176 : vector<1x8x32xf32> to vector<8x32xf32>
      %c0_53 = arith.constant 0 : index
      %c0_54 = arith.constant 0 : index
      %178 = vector.load %arg10[%c0_53, %c0_54] : memref<8x32xf32, #tpu.memory_space<vmem>>, vector<8x32xf32>
      tpu.vector_store %arg10[%c0_53, %c0_54], %177 {strides = array<i32>} : memref<8x32xf32, #tpu.memory_space<vmem>>, vector<8x32xf32>,
    } else {
    }
    %c0 = arith.constant 0 : index
    %c0_1 = arith.constant 0 : index
    %3 = vector.load %arg10[%c0, %c0_1] : memref<8x32xf32, #tpu.memory_space<vmem>>, vector<8x32xf32>
    %c0_2 = arith.constant 0 : index
    %c0_3 = arith.constant 0 : index
    %c0_4 = arith.constant 0 : index
    %4 = vector.load %arg7[%c0_2, %c0_3, %c0_4] : memref<1x10x64xf32, #tpu.memory_space<vmem>>, vector<1x10x64xf32>
    %5 = vector.shape_cast %4 : vector<1x10x64xf32> to vector<10x64xf32>
    %c0_5 = arith.constant 0 : index
    %c0_6 = arith.constant 0 : index
    %c0_7 = arith.constant 0 : index
    %6 = vector.load %arg3[%c0_5, %c0_6, %c0_7] : memref<1x32x96xbf16, #tpu.memory_space<vmem>>, vector<1x32x96xbf16>
    %7 = vector.shape_cast %6 : vector<1x32x96xbf16> to vector<32x96xbf16>
    %c0_8 = arith.constant 0 : index
    %c0_9 = arith.constant 0 : index
    %c0_10 = arith.constant 0 : index
    %8 = vector.load %arg4[%c0_8, %c0_9, %c0_10] : memref<1x32x32xbf16, #tpu.memory_space<vmem>>, vector<1x32x32xbf16>
    %9 = vector.shape_cast %8 : vector<1x32x32xbf16> to vector<32x32xbf16>
    %10 = arith.truncf %3 : vector<8x32xf32> to vector<8x32xbf16>
    %cst = arith.constant dense<0.000000e+00> : vector<8x96xf32>
    %11 = tpu.matmul %10, %7, %cst {dimension_numbers = #tpu.dot_dimension_numbers<[1], [0], [0], [1], [0, 0, 1, 1], [], []>} : vector<8x32xbf16>, vector<32x96xbf16>, vector<8x96xf32> -> vector<8x96xf32>
    %12 = vector.extract_strided_slice %11 {offsets = [0, 0], sizes = [8, 32], strides = [1, 1]} : vector<8x96xf32> to vector<8x32xf32>
    %13 = vector.extract_strided_slice %5 {offsets = [0, 0], sizes = [1, 32], strides = [1, 1]} : vector<10x64xf32> to vector<1x32xf32>
    %14 = vector.broadcast %13 : vector<1x32xf32> to vector<8x32xf32>
    %15 = arith.addf %12, %14 : vector<8x32xf32>
    %16 = vector.extract_strided_slice %11 {offsets = [0, 32], sizes = [8, 32], strides = [1, 1]} : vector<8x96xf32> to vector<8x32xf32>
    %17 = vector.extract_strided_slice %5 {offsets = [1, 0], sizes = [1, 32], strides = [1, 1]} : vector<10x64xf32> to vector<1x32xf32>
    %18 = vector.broadcast %17 : vector<1x32xf32> to vector<8x32xf32>
    %19 = arith.addf %16, %18 : vector<8x32xf32>
    %20 = vector.extract_strided_slice %11 {offsets = [0, 64], sizes = [8, 32], strides = [1, 1]} : vector<8x96xf32> to vector<8x32xf32>
    %21 = vector.extract_strided_slice %5 {offsets = [2, 0], sizes = [1, 32], strides = [1, 1]} : vector<10x64xf32> to vector<1x32xf32>
    %22 = vector.broadcast %21 : vector<1x32xf32> to vector<8x32xf32>
    %23 = arith.addf %20, %22 : vector<8x32xf32>
    %24 = vector.extract_strided_slice %15 {offsets = [0, 0], sizes = [8, 8], strides = [1, 1]} : vector<8x32xf32> to vector<8x8xf32>
    %25 = arith.truncf %24 : vector<8x8xf32> to vector<8x8xbf16>
    %26 = vector.extract_strided_slice %19 {offsets = [0, 0], sizes = [8, 8], strides = [1, 1]} : vector<8x32xf32> to vector<8x8xf32>
    %27 = arith.truncf %26 : vector<8x8xf32> to vector<8x8xbf16>
    %28 = vector.extract_strided_slice %23 {offsets = [0, 0], sizes = [8, 8], strides = [1, 1]} : vector<8x32xf32> to vector<8x8xf32>
    %29 = arith.truncf %28 : vector<8x8xf32> to vector<8x8xbf16>
    %cst_11 = arith.constant dense<0.000000e+00> : vector<8x8xf32>
    %30 = tpu.matmul %25, %27, %cst_11 {dimension_numbers = #tpu.dot_dimension_numbers<[1], [1], [0], [0], [0, 0, 1, 0], [], []>} : vector<8x8xbf16>, vector<8x8xbf16>, vector<8x8xf32> -> vector<8x8xf32>
    %cst_12 = arith.constant dense<0xFF800000> : vector<8xf32>
    %31 = vector.multi_reduction <maximumf>, %30, %cst_12 [1] : vector<8x8xf32> to vector<8xf32>
    %32 = vector.shape_cast %31 : vector<8xf32> to vector<8x1xf32>
    %33 = vector.broadcast %32 : vector<8x1xf32> to vector<8x8xf32>
    %34 = arith.subf %30, %33 : vector<8x8xf32>
    %35 = math.exp %34 : vector<8x8xf32>
    %cst_13 = arith.constant dense<0.000000e+00> : vector<8xf32>
    %36 = vector.multi_reduction <add>, %35, %cst_13 [1] : vector<8x8xf32> to vector<8xf32>
    %37 = vector.shape_cast %36 : vector<8xf32> to vector<8x1xf32>
    %38 = tpu.reciprocal %37 {approx = true} : vector<8x1xf32> -> vector<8x1xf32>
    %39 = vector.broadcast %38 : vector<8x1xf32> to vector<8x8xf32>
    %40 = arith.mulf %35, %39 : vector<8x8xf32>
    %41 = arith.truncf %40 : vector<8x8xf32> to vector<8x8xbf16>
    %cst_14 = arith.constant dense<0.000000e+00> : vector<8x8xf32>
    %42 = tpu.matmul %41, %29, %cst_14 {dimension_numbers = #tpu.dot_dimension_numbers<[1], [0], [0], [1], [0, 0, 1, 1], [], []>} : vector<8x8xbf16>, vector<8x8xbf16>, vector<8x8xf32> -> vector<8x8xf32>
    %43 = vector.extract_strided_slice %15 {offsets = [0, 8], sizes = [8, 8], strides = [1, 1]} : vector<8x32xf32> to vector<8x8xf32>
    %44 = arith.truncf %43 : vector<8x8xf32> to vector<8x8xbf16>
    %45 = vector.extract_strided_slice %19 {offsets = [0, 8], sizes = [8, 8], strides = [1, 1]} : vector<8x32xf32> to vector<8x8xf32>
    %46 = arith.truncf %45 : vector<8x8xf32> to vector<8x8xbf16>
    %47 = vector.extract_strided_slice %23 {offsets = [0, 8], sizes = [8, 8], strides = [1, 1]} : vector<8x32xf32> to vector<8x8xf32>
    %48 = arith.truncf %47 : vector<8x8xf32> to vector<8x8xbf16>
    %cst_15 = arith.constant dense<0.000000e+00> : vector<8x8xf32>
    %49 = tpu.matmul %44, %46, %cst_15 {dimension_numbers = #tpu.dot_dimension_numbers<[1], [1], [0], [0], [0, 0, 1, 0], [], []>} : vector<8x8xbf16>, vector<8x8xbf16>, vector<8x8xf32> -> vector<8x8xf32>
    %cst_16 = arith.constant dense<0xFF800000> : vector<8xf32>
    %50 = vector.multi_reduction <maximumf>, %49, %cst_16 [1] : vector<8x8xf32> to vector<8xf32>
    %51 = vector.shape_cast %50 : vector<8xf32> to vector<8x1xf32>
    %52 = vector.broadcast %51 : vector<8x1xf32> to vector<8x8xf32>
    %53 = arith.subf %49, %52 : vector<8x8xf32>
    %54 = math.exp %53 : vector<8x8xf32>
    %cst_17 = arith.constant dense<0.000000e+00> : vector<8xf32>
    %55 = vector.multi_reduction <add>, %54, %cst_17 [1] : vector<8x8xf32> to vector<8xf32>
    %56 = vector.shape_cast %55 : vector<8xf32> to vector<8x1xf32>
    %57 = tpu.reciprocal %56 {approx = true} : vector<8x1xf32> -> vector<8x1xf32>
    %58 = vector.broadcast %57 : vector<8x1xf32> to vector<8x8xf32>
    %59 = arith.mulf %54, %58 : vector<8x8xf32>
    %60 = arith.truncf %59 : vector<8x8xf32> to vector<8x8xbf16>
    %cst_18 = arith.constant dense<0.000000e+00> : vector<8x8xf32>
    %61 = tpu.matmul %60, %48, %cst_18 {dimension_numbers = #tpu.dot_dimension_numbers<[1], [0], [0], [1], [0, 0, 1, 1], [], []>} : vector<8x8xbf16>, vector<8x8xbf16>, vector<8x8xf32> -> vector<8x8xf32>
    %62 = vector.extract_strided_slice %15 {offsets = [0, 16], sizes = [8, 8], strides = [1, 1]} : vector<8x32xf32> to vector<8x8xf32>
    %63 = arith.truncf %62 : vector<8x8xf32> to vector<8x8xbf16>
    %64 = vector.extract_strided_slice %19 {offsets = [0, 16], sizes = [8, 8], strides = [1, 1]} : vector<8x32xf32> to vector<8x8xf32>
    %65 = arith.truncf %64 : vector<8x8xf32> to vector<8x8xbf16>
    %66 = vector.extract_strided_slice %23 {offsets = [0, 16], sizes = [8, 8], strides = [1, 1]} : vector<8x32xf32> to vector<8x8xf32>
    %67 = arith.truncf %66 : vector<8x8xf32> to vector<8x8xbf16>
    %cst_19 = arith.constant dense<0.000000e+00> : vector<8x8xf32>
    %68 = tpu.matmul %63, %65, %cst_19 {dimension_numbers = #tpu.dot_dimension_numbers<[1], [1], [0], [0], [0, 0, 1, 0], [], []>} : vector<8x8xbf16>, vector<8x8xbf16>, vector<8x8xf32> -> vector<8x8xf32>
    %cst_20 = arith.constant dense<0xFF800000> : vector<8xf32>
    %69 = vector.multi_reduction <maximumf>, %68, %cst_20 [1] : vector<8x8xf32> to vector<8xf32>
    %70 = vector.shape_cast %69 : vector<8xf32> to vector<8x1xf32>
    %71 = vector.broadcast %70 : vector<8x1xf32> to vector<8x8xf32>
    %72 = arith.subf %68, %71 : vector<8x8xf32>
    %73 = math.exp %72 : vector<8x8xf32>
    %cst_21 = arith.constant dense<0.000000e+00> : vector<8xf32>
    %74 = vector.multi_reduction <add>, %73, %cst_21 [1] : vector<8x8xf32> to vector<8xf32>
    %75 = vector.shape_cast %74 : vector<8xf32> to vector<8x1xf32>
    %76 = tpu.reciprocal %75 {approx = true} : vector<8x1xf32> -> vector<8x1xf32>
    %77 = vector.broadcast %76 : vector<8x1xf32> to vector<8x8xf32>
    %78 = arith.mulf %73, %77 : vector<8x8xf32>
    %79 = arith.truncf %78 : vector<8x8xf32> to vector<8x8xbf16>
    %cst_22 = arith.constant dense<0.000000e+00> : vector<8x8xf32>
    %80 = tpu.matmul %79, %67, %cst_22 {dimension_numbers = #tpu.dot_dimension_numbers<[1], [0], [0], [1], [0, 0, 1, 1], [], []>} : vector<8x8xbf16>, vector<8x8xbf16>, vector<8x8xf32> -> vector<8x8xf32>
    %81 = vector.extract_strided_slice %15 {offsets = [0, 24], sizes = [8, 8], strides = [1, 1]} : vector<8x32xf32> to vector<8x8xf32>
    %82 = arith.truncf %81 : vector<8x8xf32> to vector<8x8xbf16>
    %83 = vector.extract_strided_slice %19 {offsets = [0, 24], sizes = [8, 8], strides = [1, 1]} : vector<8x32xf32> to vector<8x8xf32>
    %84 = arith.truncf %83 : vector<8x8xf32> to vector<8x8xbf16>
    %85 = vector.extract_strided_slice %23 {offsets = [0, 24], sizes = [8, 8], strides = [1, 1]} : vector<8x32xf32> to vector<8x8xf32>
    %86 = arith.truncf %85 : vector<8x8xf32> to vector<8x8xbf16>
    %cst_23 = arith.constant dense<0.000000e+00> : vector<8x8xf32>
    %87 = tpu.matmul %82, %84, %cst_23 {dimension_numbers = #tpu.dot_dimension_numbers<[1], [1], [0], [0], [0, 0, 1, 0], [], []>} : vector<8x8xbf16>, vector<8x8xbf16>, vector<8x8xf32> -> vector<8x8xf32>
    %cst_24 = arith.constant dense<0xFF800000> : vector<8xf32>
    %88 = vector.multi_reduction <maximumf>, %87, %cst_24 [1] : vector<8x8xf32> to vector<8xf32>
    %89 = vector.shape_cast %88 : vector<8xf32> to vector<8x1xf32>
    %90 = vector.broadcast %89 : vector<8x1xf32> to vector<8x8xf32>
    %91 = arith.subf %87, %90 : vector<8x8xf32>
    %92 = math.exp %91 : vector<8x8xf32>
    %cst_25 = arith.constant dense<0.000000e+00> : vector<8xf32>
    %93 = vector.multi_reduction <add>, %92, %cst_25 [1] : vector<8x8xf32> to vector<8xf32>
    %94 = vector.shape_cast %93 : vector<8xf32> to vector<8x1xf32>
    %95 = tpu.reciprocal %94 {approx = true} : vector<8x1xf32> -> vector<8x1xf32>
    %96 = vector.broadcast %95 : vector<8x1xf32> to vector<8x8xf32>
    %97 = arith.mulf %92, %96 : vector<8x8xf32>
    %98 = arith.truncf %97 : vector<8x8xf32> to vector<8x8xbf16>
    %cst_26 = arith.constant dense<0.000000e+00> : vector<8x8xf32>
    %99 = tpu.matmul %98, %86, %cst_26 {dimension_numbers = #tpu.dot_dimension_numbers<[1], [0], [0], [1], [0, 0, 1, 1], [], []>} : vector<8x8xbf16>, vector<8x8xbf16>, vector<8x8xf32> -> vector<8x8xf32>
    %100 = tpu.concatenate %42, %61, %80, %99 in 1 : vector<8x8xf32>, vector<8x8xf32>, vector<8x8xf32>, vector<8x8xf32> -> vector<8x32xf32>
    %101 = arith.truncf %100 : vector<8x32xf32> to vector<8x32xbf16>
    %cst_27 = arith.constant dense<0.000000e+00> : vector<8x32xf32>
    %102 = tpu.matmul %101, %9, %cst_27 {dimension_numbers = #tpu.dot_dimension_numbers<[1], [0], [0], [1], [0, 0, 1, 1], [], []>} : vector<8x32xbf16>, vector<32x32xbf16>, vector<8x32xf32> -> vector<8x32xf32>
    %103 = vector.extract_strided_slice %5 {offsets = [3, 0], sizes = [1, 32], strides = [1, 1]} : vector<10x64xf32> to vector<1x32xf32>
    %104 = vector.broadcast %103 : vector<1x32xf32> to vector<8x32xf32>
    %105 = arith.addf %102, %104 : vector<8x32xf32>
    %106 = arith.addf %3, %105 : vector<8x32xf32>
    %cst_28 = arith.constant dense<0.000000e+00> : vector<8xf32>
    %107 = vector.multi_reduction <add>, %106, %cst_28 [1] : vector<8x32xf32> to vector<8xf32>
    %108 = vector.shape_cast %107 : vector<8xf32> to vector<8x1xf32>
    %cst_29 = arith.constant 3.200000e+01 : f32
    %109 = vector.broadcast %cst_29 : f32 to vector<8x1xf32>
    %110 = arith.divf %108, %109 : vector<8x1xf32>
    %111 = vector.broadcast %110 : vector<8x1xf32> to vector<8x32xf32>
    %112 = arith.subf %106, %111 : vector<8x32xf32>
    %113 = arith.mulf %112, %112 : vector<8x32xf32>
    %cst_30 = arith.constant dense<0.000000e+00> : vector<8xf32>
    %114 = vector.multi_reduction <add>, %113, %cst_30 [1] : vector<8x32xf32> to vector<8xf32>
    %115 = vector.shape_cast %114 : vector<8xf32> to vector<8x1xf32>
    %cst_31 = arith.constant 3.200000e+01 : f32
    %116 = vector.broadcast %cst_31 : f32 to vector<8x1xf32>
    %117 = arith.divf %115, %116 : vector<8x1xf32>
    %118 = vector.broadcast %110 : vector<8x1xf32> to vector<8x32xf32>
    %119 = arith.subf %106, %118 : vector<8x32xf32>
    %cst_32 = arith.constant 9.99999974E-6 : f32
    %120 = vector.broadcast %cst_32 : f32 to vector<8x1xf32>
    %121 = arith.addf %117, %120 : vector<8x1xf32>
    %122 = math.rsqrt %121 : vector<8x1xf32>
    %123 = vector.broadcast %122 : vector<8x1xf32> to vector<8x32xf32>
    %124 = arith.mulf %119, %123 : vector<8x32xf32>
    %125 = vector.extract_strided_slice %5 {offsets = [4, 0], sizes = [1, 32], strides = [1, 1]} : vector<10x64xf32> to vector<1x32xf32>
    %126 = vector.broadcast %125 : vector<1x32xf32> to vector<8x32xf32>
    %127 = arith.mulf %124, %126 : vector<8x32xf32>
    %128 = vector.extract_strided_slice %5 {offsets = [5, 0], sizes = [1, 32], strides = [1, 1]} : vector<10x64xf32> to vector<1x32xf32>
    %129 = vector.broadcast %128 : vector<1x32xf32> to vector<8x32xf32>
    %130 = arith.addf %127, %129 : vector<8x32xf32>
    %131 = arith.truncf %130 : vector<8x32xf32> to vector<8x32xbf16>
    %c0_33 = arith.constant 0 : index
    %c0_34 = arith.constant 0 : index
    %c0_35 = arith.constant 0 : index
    %132 = vector.load %arg5[%c0_33, %c0_34, %c0_35] : memref<1x32x64xbf16, #tpu.memory_space<vmem>>, vector<1x32x64xbf16>
    %133 = vector.shape_cast %132 : vector<1x32x64xbf16> to vector<32x64xbf16>
    %cst_36 = arith.constant dense<0.000000e+00> : vector<8x64xf32>
    %134 = tpu.matmul %131, %133, %cst_36 {dimension_numbers = #tpu.dot_dimension_numbers<[1], [0], [0], [1], [0, 0, 1, 1], [], []>} : vector<8x32xbf16>, vector<32x64xbf16>, vector<8x64xf32> -> vector<8x64xf32>
    %135 = vector.extract_strided_slice %5 {offsets = [6, 0], sizes = [1, 64], strides = [1, 1]} : vector<10x64xf32> to vector<1x64xf32>
    %136 = vector.broadcast %135 : vector<1x64xf32> to vector<8x64xf32>
    %137 = arith.addf %134, %136 : vector<8x64xf32>
    %cst_37 = arith.constant 0.000000e+00 : f32
    %138 = vector.broadcast %cst_37 : f32 to vector<8x64xf32>
    %139 = arith.maximumf %137, %138 : vector<8x64xf32>
    %140 = arith.truncf %139 : vector<8x64xf32> to vector<8x64xbf16>
    %c0_38 = arith.constant 0 : index
    %c0_39 = arith.constant 0 : index
    %c0_40 = arith.constant 0 : index
    %141 = vector.load %arg6[%c0_38, %c0_39, %c0_40] : memref<1x64x32xbf16, #tpu.memory_space<vmem>>, vector<1x64x32xbf16>
    %142 = vector.shape_cast %141 : vector<1x64x32xbf16> to vector<64x32xbf16>
    %cst_41 = arith.constant dense<0.000000e+00> : vector<8x32xf32>
    %143 = tpu.matmul %140, %142, %cst_41 {dimension_numbers = #tpu.dot_dimension_numbers<[1], [0], [0], [1], [0, 0, 1, 1], [], []>} : vector<8x64xbf16>, vector<64x32xbf16>, vector<8x32xf32> -> vector<8x32xf32>
    %144 = vector.extract_strided_slice %5 {offsets = [7, 0], sizes = [1, 32], strides = [1, 1]} : vector<10x64xf32> to vector<1x32xf32>
    %145 = vector.broadcast %144 : vector<1x32xf32> to vector<8x32xf32>
    %146 = arith.addf %143, %145 : vector<8x32xf32>
    %147 = arith.addf %130, %146 : vector<8x32xf32>
    %cst_42 = arith.constant dense<0.000000e+00> : vector<8xf32>
    %148 = vector.multi_reduction <add>, %147, %cst_42 [1] : vector<8x32xf32> to vector<8xf32>
    %149 = vector.shape_cast %148 : vector<8xf32> to vector<8x1xf32>
    %cst_43 = arith.constant 3.200000e+01 : f32
    %150 = vector.broadcast %cst_43 : f32 to vector<8x1xf32>
    %151 = arith.divf %149, %150 : vector<8x1xf32>
    %152 = vector.broadcast %151 : vector<8x1xf32> to vector<8x32xf32>
    %153 = arith.subf %147, %152 : vector<8x32xf32>
    %154 = arith.mulf %153, %153 : vector<8x32xf32>
    %cst_44 = arith.constant dense<0.000000e+00> : vector<8xf32>
    %155 = vector.multi_reduction <add>, %154, %cst_44 [1] : vector<8x32xf32> to vector<8xf32>
    %156 = vector.shape_cast %155 : vector<8xf32> to vector<8x1xf32>
    %cst_45 = arith.constant 3.200000e+01 : f32
    %157 = vector.broadcast %cst_45 : f32 to vector<8x1xf32>
    %158 = arith.divf %156, %157 : vector<8x1xf32>
    %159 = vector.broadcast %151 : vector<8x1xf32> to vector<8x32xf32>
    %160 = arith.subf %147, %159 : vector<8x32xf32>
    %cst_46 = arith.constant 9.99999974E-6 : f32
    %161 = vector.broadcast %cst_46 : f32 to vector<8x1xf32>
    %162 = arith.addf %158, %161 : vector<8x1xf32>
    %163 = math.rsqrt %162 : vector<8x1xf32>
    %164 = vector.broadcast %163 : vector<8x1xf32> to vector<8x32xf32>
    %165 = arith.mulf %160, %164 : vector<8x32xf32>
    %166 = vector.extract_strided_slice %5 {offsets = [8, 0], sizes = [1, 32], strides = [1, 1]} : vector<10x64xf32> to vector<1x32xf32>
    %167 = vector.broadcast %166 : vector<1x32xf32> to vector<8x32xf32>
    %168 = arith.mulf %165, %167 : vector<8x32xf32>
    %169 = vector.extract_strided_slice %5 {offsets = [9, 0], sizes = [1, 32], strides = [1, 1]} : vector<10x64xf32> to vector<1x32xf32>
    %170 = vector.broadcast %169 : vector<1x32xf32> to vector<8x32xf32>
    %171 = arith.addf %168, %170 : vector<8x32xf32>
    %c0_47 = arith.constant 0 : index
    %c0_48 = arith.constant 0 : index
    %172 = vector.load %arg10[%c0_47, %c0_48] : memref<8x32xf32, #tpu.memory_space<vmem>>, vector<8x32xf32>
    tpu.vector_store %arg10[%c0_47, %c0_48], %171 {strides = array<i32>} : memref<8x32xf32, #tpu.memory_space<vmem>>, vector<8x32xf32>,
    %c1_i32 = arith.constant 1 : i32
    %173 = arith.cmpi eq, %arg1, %c1_i32 : i32
    %174 = arith.extui %173 : i1 to i32
    %c0_i32_49 = arith.constant 0 : i32
    %175 = arith.cmpi ne, %174, %c0_i32_49 : i32
    scf.if %175 {
      %cst_50 = arith.constant dense<0.000000e+00> : vector<8xf32>
      %176 = vector.multi_reduction <add>, %171, %cst_50 [1] : vector<8x32xf32> to vector<8xf32>
      %177 = vector.shape_cast %176 : vector<8xf32> to vector<8x1xf32>
      %cst_51 = arith.constant 3.200000e+01 : f32
      %178 = vector.broadcast %cst_51 : f32 to vector<8x1xf32>
      %179 = arith.divf %177, %178 : vector<8x1xf32>
      %180 = vector.broadcast %179 : vector<8x1xf32> to vector<8x32xf32>
      %181 = arith.subf %171, %180 : vector<8x32xf32>
      %182 = arith.mulf %181, %181 : vector<8x32xf32>
      %cst_52 = arith.constant dense<0.000000e+00> : vector<8xf32>
      %183 = vector.multi_reduction <add>, %182, %cst_52 [1] : vector<8x32xf32> to vector<8xf32>
      %184 = vector.shape_cast %183 : vector<8xf32> to vector<8x1xf32>
      %cst_53 = arith.constant 3.200000e+01 : f32
      %185 = vector.broadcast %cst_53 : f32 to vector<8x1xf32>
      %186 = arith.divf %184, %185 : vector<8x1xf32>
      %187 = vector.broadcast %179 : vector<8x1xf32> to vector<8x32xf32>
      %188 = arith.subf %171, %187 : vector<8x32xf32>
      %cst_54 = arith.constant 9.99999974E-6 : f32
      %189 = vector.broadcast %cst_54 : f32 to vector<8x1xf32>
      %190 = arith.addf %186, %189 : vector<8x1xf32>
      %191 = math.rsqrt %190 : vector<8x1xf32>
      %192 = vector.broadcast %191 : vector<8x1xf32> to vector<8x32xf32>
      %193 = arith.mulf %188, %192 : vector<8x32xf32>
      %c0_55 = arith.constant 0 : index
      %c0_56 = arith.constant 0 : index
      %194 = vector.load %arg8[%c0_55, %c0_56] : memref<2x32xf32, #tpu.memory_space<vmem>>, vector<1x32xf32>
      %195 = vector.broadcast %194 : vector<1x32xf32> to vector<8x32xf32>
      %196 = arith.mulf %193, %195 : vector<8x32xf32>
      %c1 = arith.constant 1 : index
      %c0_57 = arith.constant 0 : index
      %197 = vector.load %arg8[%c1, %c0_57] : memref<2x32xf32, #tpu.memory_space<vmem>>, vector<1x32xf32>
      %198 = vector.broadcast %197 : vector<1x32xf32> to vector<8x32xf32>
      %199 = arith.addf %196, %198 : vector<8x32xf32>
      %c0_58 = arith.constant 0 : index
      %c0_59 = arith.constant 0 : index
      %c0_60 = arith.constant 0 : index
      %200 = vector.load %arg9[%c0_58, %c0_59, %c0_60] : memref<1x8x32xf32, #tpu.memory_space<vmem>>, vector<1x8x32xf32>
      %201 = vector.shape_cast %200 : vector<1x8x32xf32> to vector<8x32xf32>
      %202 = vector.shape_cast %199 : vector<8x32xf32> to vector<1x8x32xf32>
      tpu.vector_store %arg9[%c0_58, %c0_59, %c0_60], %202 {strides = array<i32>} : memref<1x8x32xf32, #tpu.memory_space<vmem>>, vector<1x8x32xf32>,
    } else {
    }
    return
  }
  func.func @transform_0(%arg0: i32, %arg1: i32) -> (i32, i32, i32) {
    %c0_i32 = arith.constant 0 : i32
    %c0_i32_0 = arith.constant 0 : i32
    %c0_i32_1 = arith.constant 0 : i32
    return %arg0, %c0_i32, %c0_i32_0 : i32, i32, i32
  }
  func.func @transform_1(%arg0: i32, %arg1: i32) -> (i32, i32, i32) {
    %c0_i32 = arith.constant 0 : i32
    %c0_i32_0 = arith.constant 0 : i32
    %c0_i32_1 = arith.constant 0 : i32
    return %arg1, %c0_i32, %c0_i32_0 : i32, i32, i32
  }
  func.func @transform_2(%arg0: i32, %arg1: i32) -> (i32, i32, i32) {
    %c0_i32 = arith.constant 0 : i32
    %c0_i32_0 = arith.constant 0 : i32
    %c0_i32_1 = arith.constant 0 : i32
    return %arg1, %c0_i32, %c0_i32_0 : i32, i32, i32
  }
  func.func @transform_3(%arg0: i32, %arg1: i32) -> (i32, i32, i32) {
    %c0_i32 = arith.constant 0 : i32
    %c0_i32_0 = arith.constant 0 : i32
    %c0_i32_1 = arith.constant 0 : i32
    return %arg1, %c0_i32, %c0_i32_0 : i32, i32, i32
  }
  func.func @transform_4(%arg0: i32, %arg1: i32) -> (i32, i32, i32) {
    %c0_i32 = arith.constant 0 : i32
    %c0_i32_0 = arith.constant 0 : i32
    %c0_i32_1 = arith.constant 0 : i32
    return %arg1, %c0_i32, %c0_i32_0 : i32, i32, i32
  }
  func.func @transform_5(%arg0: i32, %arg1: i32) -> (i32, i32, i32) {
    %c0_i32 = arith.constant 0 : i32
    %c0_i32_0 = arith.constant 0 : i32
    %c0_i32_1 = arith.constant 0 : i32
    return %arg1, %c0_i32, %c0_i32_0 : i32, i32, i32
  }
  func.func @transform_6(%arg0: i32, %arg1: i32) -> (i32, i32) {
    %c0_i32 = arith.constant 0 : i32
    %c0_i32_0 = arith.constant 0 : i32
    %c0_i32_1 = arith.constant 0 : i32
    return %c0_i32, %c0_i32_0 : i32, i32
  }
  func.func @transform_7(%arg0: i32, %arg1: i32) -> (i32, i32, i32) {
    %c0_i32 = arith.constant 0 : i32
    %c0_i32_0 = arith.constant 0 : i32
    %c0_i32_1 = arith.constant 0 : i32
    return %arg0, %c0_i32, %c0_i32_0 : i32, i32, i32
  }
}

</mosaic_0001>

<bundles_post_ra>
// kernel: tpu_custom_call.1
= control target key start
LH: loop header
LB: loop body
LE: loop exit
PB: predicated region body
PF: predicated region fallthrough
CT: control target
= control target key end

     0   :  { %12 = vsyncpa [#allocation4], 0  ;;  %s1640_s0 = inlined_call_operand.vmem [shape: f32[2,8,32], index: 0, kind: input, shape index: {}]   ;;  %s1641_s1 = inlined_call_operand.vmem [shape: bf16[2,32,96], index: 1, kind: input, shape index: {}]   ;;  %s1642_s2 = inlined_call_operand.vmem [shape: bf16[2,32,32], index: 2, kind: input, shape index: {}]   ;;  %s1643_s3 = inlined_call_operand.vmem [shape: bf16[2,32,64], index: 3, kind: input, shape index: {}]   ;;  %s1644_s4 = inlined_call_operand.vmem [shape: bf16[2,64,32], index: 4, kind: input, shape index: {}]   ;;  %s1645_s5 = inlined_call_operand.vmem [shape: f32[2,10,64], index: 5, kind: input, shape index: {}]   ;;  %s1646_s6 = inlined_call_operand.vmem [shape: f32[2,32], index: 6, kind: input, shape index: {}]   ;;  %s1647_s7 = inlined_call_operand.hbm [shape: f32[2,8,32], index: 7, kind: output, shape index: {}]  }
   0x1   :  { %14 = vsyncpa [#allocation4 + $0x1], 0  ;;  %s1408_s24 = smov 0   ;;  %s1410_s25 = smov 0  }
   0x2   :  { %s1412_s26 = smov 0   ;;  %s1414_s27 = smov 0  }
   0x3   :  { %s1416_s28 = smov 0   ;;  %s1418_s29 = smov 0  }
   0x4   :  { %s1420_s30 = smov 0   ;;  %s1422_s8 = smov 0  }
   0x5 LB: > { %1657 = sst [smem:[#allocation6_spill]] %s1322_s24  ;;  %s1053_s9 = sadd.s32 4294967295, %s1350_s8   ;;  %s1350_s8 = sphi %s1422_s8, %s20_s8   ;;  %s1346_s30 = sphi %s1420_s30, %s1677_s30   ;;  %s1342_s29 = sphi %s1418_s29, %s1676_s29   ;;  %s1338_s28 = sphi %s1416_s28, %s1675_s28   ;;  %s1334_s27 = sphi %s1414_s27, %s1674_s27   ;;  %s1330_s26 = sphi %s1412_s26, %s1673_s26   ;;  %s1326_s25 = sphi %s1410_s25, %s1679_s25   ;;  %s1322_s24 = sphi %s1408_s24, %s1678_s24  }
   0x6   : > { %1658 = sst [smem:[#allocation7_spill]] %s1330_s26  ;;  %s1054_s10 = sadd.s32 4294967294, %s1350_s8  }
   0x7   : > { %1659 = sst [smem:[#allocation8_spill]] %s1342_s29  ;;  %s29_s11 = sadd.s32 1, %s1342_s29 }
   0x8   : > { %1660 = sst [smem:[#allocation9_spill]] %s1346_s30  ;;  %p30_p0 = scmp.ge.s32.totalorder %s29_s11, 2 }
   0x9   : > { %1661 = sst [smem:[#allocation10_spill]] %s1350_s8  ;;  %s32_s12 = sadd.s32 1, %s1346_s30 }
   0xa   : > { %p226_p1 = scmp.ne.s32.totalorder %s1330_s26, %s1326_s25  ;;  %p227_p2 = scmp.eq.s32.totalorder %s1053_s9, 3 }
   0xb   : > { %s1681_s11 = smov (%p30_p0, %s29_s11), 0  ;;  %s1683_s12 = smov (!%p30_p0, %s32_s12), %s1346_s30 }
   0xc   : > { %1662 = sst [smem:[#allocation11_spill]] %s1681_s11  ;;  %p1457_p3 = por %p227_p2, %p226_p1 }
   0xd   : > { %p232_p4 = scmp.ne.s32.totalorder %s1326_s25, %s1322_s24  ;;  %p34_p5 = scmp.ge.s32.totalorder %s1683_s12, 2 }
   0xe   : > { %p233_p6 = scmp.eq.s32.totalorder %s1054_s10, 3  ;;  %p1057_p7 = scmp.ge.s32.totalorder %s1350_s8, 1 }
   0xf   : > { %p301_p8 = scmp.lt.s32.totalorder %s1350_s8, 5  ;;  %s1685_s12 = smov (%p34_p5, %s1683_s12), 0 }
  0x10   : > { %1664 = sst [smem:[#allocation12_spill]] %s1685_s12  ;;  %p1467_p9 = por %p233_p6, %p232_p4 }
  0x11   : > { %p302_p10 = pnand %p1057_p7, %p301_p8  ;;  %s213_s15 = ssub.s32 %s1346_s30, %s1685_s12 }
  0x12   : > { %s1665_s14 = scalar_select %p1467_p9, 1, 0 }
  0x13   : > { %s216_s16 = sadd.s32 1, %s1330_s26  ;;  %p214_p11 = scmp.eq.s32.totalorder %s213_s15, 0 }
  0x14   : > { %1666 = sst [smem:[#allocation13_spill]] %s1665_s14  ;;  %305 = sbr.rel (%p302_p10) target bundleno = 2187 (0x88b), region = 48 }
  0x15   : > { %s1475_s17 = scalar_select %p214_p11, %s1330_s26, %s216_s16  }
  0x16   : > { %s1651_s18 = sand.u32 (!%p302_p10), 1, %s1326_s25   ;;  %p357_p12 = scmp.lt.s32.totalorder (!%p302_p10), %s1338_s28, 1 }
  0x17   : > { %1667 = sst [smem:[#allocation14_spill]] %s1475_s17  ;;  %s1481_s19 = sshll.u32 (!%p302_p10), %s1651_s18, 3 }
  0x18   : > { %p361_p13 = scmp.lt.s32.totalorder (!%p302_p10), %s1334_s27, 1  ;;  %s356_s16 = scalar_lea.vmem (!%p302_p10), [#allocation3], %s1481_s19 }
  0x19   : > { %s358_s20 = scalar_select %p357_p12, %s1338_s28, 1 }
  0x1a   : > { %s362_s21 = scalar_select %p361_p13, %s1334_s27, 1 }
  0x1b   : > { %s1059_s22 = sshll.u32 %s358_s20, 3  ;;  %p1070_p0 = scmp.ne.s32.totalorder %s1334_s27, 0 }
  0x1c   : > { %s360_s10 = scalar_lea.vmem %s1640_s0, %s1059_s22  ;;  %s1128_s15 = sshll.u32 %s362_s21, 4 }
  0x1d   : > { %s365_s11 = scalar_lea.vmem %s1641_s1, %s1128_s15  ;;  %s1495_s17 = scalar_lea.vmem %s1642_s2, %s1128_s15 }
  0x1e   : > { %s1500_s14 = scalar_lea.vmem %s1643_s3, %s1128_s15  ;;  %s1131_s20 = sshll.u32 %s362_s21, 5 }
  0x1f   : > { %s1505_s22 = scalar_lea.vmem %s1644_s4, %s1131_s20  ;;  %s1510_s12 = scalar_lea.vmem %s1645_s5, %s1128_s15 }
  0x20   : > { %390 = sbr.rel (%p1070_p0) target bundleno = 39 (0x27), region = 52 }
  0x25   : > { %v391_v0 = vld [vmem:[%s360_s10] sm:$0xff]  ;;  %vm392_vm0 = vcmask 261120  }
  0x26   : > { %393 = vst.msk [vmem:[#allocation2] sm:$0xff] %vm392_vm0, %v391_v0 }
  0x27 PF: > { %v1134_v1 = vld [vmem:[%s365_s11 + $0x8] sm:$0xff]  ;;  %v1515_v2 = vld [vmem:[%s1510_s12] sm:$0xff]  ;;  %s1352_s24 = smov 32   ;;  %vm418_vm1 = vcmask 261120   ;;  %s1353_s26 = smov 72   ;;  %vm455_vm2 = vcmask 64512  }
  0x28   : > { %428 = vmatpush.bf16.msra.mxu0 %v1134_v1  ;;  %v1133_v3 = vld [vmem:[%s365_s11] sm:$0xff]  ;;  %v437_v5 = vperm.slane %v1515_v2, 1  ;;  %v435_v10 = vperm.slane %v1515_v2, 0  ;;  %s1354_s29 = smov 88   ;;  %s1355_s30 = smov 96   ;;  %v443_v15 = vperm.slane %v1515_v2, 2 }
  0x29   : > { %s1356_s8 = smov 104   ;;  %s1357_s11 = smov 120   ;;  %vm493_vm3 = vcmask 1043456   ;;  %vm692_vm4 = vcmask 130048   ;;  %vm694_vm5 = vcmask 195584   ;;  %vm829_vm10 = vcmask 523264  }
  0x2a   : > { %439 = vrot.lane.b32.xlu0 %v437_v5, %s1352_s24  ;;  %s1358_s18 = smov 80   ;;  %s1359_s21 = smov 112  }
  0x2b   : > { %s1360_s10 = smov 64   ;;  %s1361_s15 = smov 56  }
  0x2c   : > { %429 = vmatpush.bf16.msra.mxu0 %v1133_v3  ;;  %s1362_s20 = smov 48   ;;  %s1363_s23 = smov 40  }
  0x2d   : > { %v1517_v4 = vld [vmem:[#allocation2] sm:$0xff]  ;;  %s1364_s9 = smov 16   ;;  %s1365_s24 = smov 8  }
  0x2e   : > { %v405_v6 = vpack.c.bf16 %v1517_v4, %v1517_v4  ;;  %p1123_p1 = scmp.ne.s32.totalorder %s1334_s27, 1 }
  0x30   : > { %1079 = vmatmul.msk.bf16.vlgmr.msra.gmra.mxu0 %vm418_vm1, %v405_v6 }
  0x9c   : > { %v440_v7 = vpop.permute.xlu0 %439 }
  0xad   : > { %v431_v8 = vpop.f32.mrf.mxu0 }
  0xae   : > { %v442_v9 = vadd.f32 %v440_v7, %v431_v8  ;;  %v436_v12 = vadd.f32 %v435_v10, %v431_v8 }
  0xb0   : > { %v450_v11 = vpack.c.bf16 %v442_v9, %v442_v9  ;;  %v449_v14 = vpack.c.bf16 %v436_v12, %v436_v12 }
  0xb2   : > { %625 = vrot.lane.b32.xlu2 %v450_v11, %s1353_s26  ;;  %513 = vrot.lane.b32.xlu1 %v450_v11, %s1354_s29  ;;  %s1366_s26 = smov 24  }
  0xb3   : > { %453 = vrot.lane.b32.xlu0 %v450_v11, %s1355_s30 }
  0xb5   : > { %v433_v13 = vpop.f32.mrf.mxu0 }
  0xba   : > { %623 = vrot.lane.b32.xlu2 %v449_v14, %s1356_s8  ;;  %511 = vrot.lane.b32.xlu1 %v449_v14, %s1357_s11 }
  0xbb   : > { %569 = vrot.lane.b32.xlu0 %v450_v11, %s1358_s18 }
  0xc2   : > { %567 = vrot.lane.b32.xlu1 %v449_v14, %s1359_s21 }
  0xca   : > { %445 = vrot.lane.b32.xlu1 %v443_v15, %s1360_s10 }
 0x10c   : > { %v626_v16 = vpop.permute.xlu2 %625 }
 0x10d   : > { %v631_v21 = vsel %vm455_vm2, %v626_v16, 0 }
 0x114   : > { %v624_v26 = vpop.permute.xlu2 %623 }
 0x124   : > { %v514_v17 = vpop.permute.xlu1 %513 }
 0x125   : > { %v454_v18 = vpop.permute.xlu0 %453  ;;  %v519_v19 = vsel %vm455_vm2, %v514_v17, 0 }
 0x126   : > { %v460_v20 = vsel %vm455_vm2, %v454_v18, 0  ;;  %528 = vmatpush.bf16.xpose.msra.mxu3 %v519_v19 }
 0x127   : > { %469 = vmatpush.bf16.xpose.msra.mxu1 %v460_v20 }
 0x12c   : > { %v512_v22 = vpop.permute.xlu1 %511 }
 0x12d   : > { %v570_v23 = vpop.permute.xlu0 %569  ;;  %1082 = vmatmul.msk.bf16.vlgmr.msra.gmra.mxu3 %vm455_vm2, %v512_v22 }
 0x12e   : > { %640 = vmatpush.bf16.xpose.msrb.mxu3 %v631_v21  ;;  %1080 = vmatmul.msk.bf16.vlgmr.msra.gmra.mxu1 %vm455_vm2, %v449_v14  ;;  %v575_v24 = vsel %vm455_vm2, %v570_v23, 0 }
 0x12f   : > { %584 = vmatpush.bf16.xpose.msrb.mxu0 %v575_v24 }
 0x134   : > { %v568_v25 = vpop.permute.xlu1 %567 }
 0x136   : > { %1084 = vmatmul.msk.bf16.vlgmr.msrb.gmra.mxu0 %vm455_vm2, %v568_v25 }
 0x13c   : > { %v446_v36 = vpop.permute.xlu1 %445 }
 0x13d   : > { %1086 = vmatmul.msk.bf16.vlgmr.msrb.gmra.mxu3 %vm455_vm2, %v624_v26  ;;  %v448_v37 = vadd.f32 %v446_v36, %v431_v8 }
 0x13f   : > { %v451_v40 = vpack.c.bf16 %v448_v37, %v448_v37 }
 0x1ab   : > { %v471_v27 = vpop.f32.mrf.mxu1 }
 0x1ac   : > { %v475_v28 = vsel %vm455_vm2, %v471_v27, -inf }
 0x1ad   : > { %476 = vmax.xlane.f32.xlu2 %v475_v28 }
 0x1b0   : > { %v530_v29 = vpop.f32.mrf.mxu3 }
 0x1b1   : > { %v534_v30 = vsel %vm455_vm2, %v530_v29, -inf }
 0x1b2   : > { %535 = vmax.xlane.f32.xlu0 %v534_v30 }
 0x1b3   : > { %v473_v31 = vpop.f32.mrf.mxu1  ;;  %v586_v32 = vpop.f32.mrf.mxu0 }
 0x1b4   : > { %v590_v33 = vsel %vm455_vm2, %v586_v32, -inf }
 0x1b5   : > { %591 = vmax.xlane.f32.xlu2 %v590_v33  ;;  %v1135_v33 = vld [vmem:[%s1495_s17] sm:$0xff] }
 0x1b8   : > { %v532_v34 = vpop.f32.mrf.mxu3 }
 0x1bb   : > { %v588_v35 = vpop.f32.mrf.mxu0 }
 0x1c0   : > { %v642_v38 = vpop.f32.mrf.mxu3 }
 0x1c1   : > { %v646_v39 = vsel %vm455_vm2, %v642_v38, -inf }
 0x1c2   : > { %647 = vmax.xlane.f32.xlu1 %v646_v39 }
 0x1c6   : > { %488 = vrot.lane.b32.xlu0 %v451_v40, %s1360_s10 }
 0x1c8   : > { %v644_v41 = vpop.f32.mrf.mxu3 }
 0x1c9   : > { %v697_v41 = vperm.slane %v1515_v2, 3 }
 0x1db   : > { %546 = vrot.lane.b32.xlu1 %v451_v40, %s1361_s15 }
 0x1e3   : > { %602 = vrot.lane.b32.xlu1 %v451_v40, %s1362_s20 }
 0x220   : > { %v477_v42 = vpop.xlane.xlu2 %476 }
 0x221   : > { %v478_v43 = vsub.f32 %v471_v27, %v477_v42 }
 0x223   : > { %v479_v44 = vmul.f32 1.442695, %v478_v43 }
 0x225   : > { %1230 = vpow2.f32 %v479_v44  ;;  %v536_v45 = vpop.xlane.xlu0 %535 }
 0x226   : > { %v537_v46 = vsub.f32 %v530_v29, %v536_v45 }
 0x228   : > { %v538_v47 = vmul.f32 1.442695, %v537_v46  ;;  %v592_v48 = vpop.xlane.xlu2 %591 }
 0x229   : > { %v593_v49 = vsub.f32 %v586_v32, %v592_v48  ;;  %v1136_v32 = vld [vmem:[%s1495_s17 + $0x8] sm:$0xff] }
 0x22a   : > { %1232 = vpow2.f32 %v538_v47  ;;  %719 = vmatpush.bf16.msra.mxu0 %v1136_v32  ;;  %v1367_v47 = vmov 32.0  }
 0x22b   : > { %v1231_v50 = vpop.eup %1230  ;;  %v594_v51 = vmul.f32 1.442695, %v593_v49 }
 0x22c   : > { %v481_v52 = vsel %vm455_vm2, %v1231_v50, 0.0 }
 0x22d   : > { %1234 = vpow2.f32 %v594_v51  ;;  %482 = vadd.xlane.f32.xlu2 %v481_v52 }
 0x22e   : > { %720 = vmatpush.bf16.msra.mxu0 %v1135_v33 }
 0x230   : > { %v1233_v53 = vpop.eup %1232 }
 0x231   : > { %v540_v55 = vsel %vm455_vm2, %v1233_v53, 0.0 }
 0x233   : > { %v1235_v54 = vpop.eup %1234 }
 0x234   : > { %v596_v56 = vsel %vm455_vm2, %v1235_v54, 0.0 }
 0x235   : > { %541 = vadd.xlane.f32.xlu2 %v540_v55  ;;  %597 = vadd.xlane.f32.xlu0 %v596_v56  ;;  %v648_v57 = vpop.xlane.xlu1 %647 }
 0x236   : > { %v649_v58 = vsub.f32 %v642_v38, %v648_v57 }
 0x238   : > { %v650_v59 = vmul.f32 1.442695, %v649_v58  ;;  %v489_v60 = vpop.permute.xlu0 %488  ;;  %v1138_v58 = vld [vmem:[%s1500_s14 + $0x8] sm:$0xff] }
 0x239   : > { %v495_v61 = vsel %vm493_vm3, %v489_v60, 0  ;;  %v1142_v60 = vld [vmem:[%s1505_s22 + $0x18] sm:$0xff] }
 0x23a   : > { %1236 = vpow2.f32 %v650_v59  ;;  %504 = vmatpush.bf16.msra.mxu2 %v495_v61  ;;  %v1137_v59 = vld [vmem:[%s1500_s14] sm:$0xff]  ;;  %837 = vmatpush.bf16.msra.mxu3 %v1142_v60 }
 0x240   : > { %v1237_v62 = vpop.eup %1236 }
 0x241   : > { %v652_v63 = vsel %vm455_vm2, %v1237_v62, 0.0 }
 0x242   : > { %653 = vadd.xlane.f32.xlu2 %v652_v63  ;;  %v1141_v63 = vld [vmem:[%s1505_s22 + $0x10] sm:$0xff] }
 0x243   : > { %838 = vmatpush.bf16.msra.mxu3 %v1141_v63 }
 0x24d   : > { %v547_v0 = vpop.permute.xlu1 %546 }
 0x24e   : > { %v552_v1 = vsel %vm493_vm3, %v547_v0, 0 }
 0x24f   : > { %561 = vmatpush.bf16.msrb.mxu2 %v552_v1 }
 0x255   : > { %v603_v3 = vpop.permute.xlu1 %602 }
 0x256   : > { %v608_v5 = vsel %vm493_vm3, %v603_v3, 0 }
 0x257   : > { %617 = vmatpush.bf16.msrb.mxu1 %v608_v5 }
 0x25a   : > { %658 = vrot.lane.b32.xlu2 %v451_v40, %s1363_s23 }
 0x25b   : > { %787 = vmatpush.bf16.msra.mxu1 %v1138_v58 }
 0x25f   : > { %788 = vmatpush.bf16.msra.mxu1 %v1137_v59 }
 0x2a0   : > { %v483_v6 = vpop.xlane.xlu2 %482 }
 0x2a1   : > { %1238 = vrcp.f32 %v483_v6 }
 0x2a7   : > { %v1239_v7 = vpop.eup %1238 }
 0x2a8   : > { %v598_v8 = vpop.xlane.xlu0 %597  ;;  %v485_v9 = vmul.f32 %v1239_v7, %v1231_v50  ;;  %v542_v10 = vpop.xlane.xlu2 %541 }
 0x2a9   : > { %1240 = vrcp.f32 %v598_v8 }
 0x2aa   : > { %v486_v11 = vpack.c.bf16 %v485_v9, %v485_v9  ;;  %1242 = vrcp.f32 %v542_v10  ;;  %v756_v9 = vperm.slane %v1515_v2, 4 }
 0x2ac   : > { %1081 = vmatmul.msk.bf16.vlgmr.msra.gmra.mxu2 %vm455_vm2, %v486_v11  ;;  %v758_v11 = vperm.slane %v1515_v2, 5 }
 0x2af   : > { %v1241_v12 = vpop.eup %1240 }
 0x2b0   : > { %v600_v13 = vmul.f32 %v1241_v12, %v1235_v54  ;;  %v1243_v15 = vpop.eup %1242 }
 0x2b1   : > { %v544_v17 = vmul.f32 %v1243_v15, %v1233_v53 }
 0x2b2   : > { %v601_v14 = vpack.c.bf16 %v600_v13, %v600_v13 }
 0x2b3   : > { %v545_v18 = vpack.c.bf16 %v544_v17, %v544_v17  ;;  %v1139_v17 = vld [vmem:[%s1505_s22] sm:$0xff] }
 0x2b4   : > { %1085 = vmatmul.msk.bf16.vlgmr.msrb.gmra.mxu1 %vm455_vm2, %v601_v14 }
 0x2b5   : > { %v654_v16 = vpop.xlane.xlu2 %653 }
 0x2b6   : > { %1244 = vrcp.f32 %v654_v16  ;;  %v1140_v16 = vld [vmem:[%s1505_s22 + $0x8] sm:$0xff] }
 0x2b7   : > { %1246 = vrcp.f32 %v1367_v47  ;;  %839 = vmatpush.bf16.msra.mxu3 %v1140_v16 }
 0x2bb   : > { %840 = vmatpush.bf16.msra.mxu3 %v1139_v17 }
 0x2bc   : > { %1083 = vmatmul.msk.bf16.vlgmr.msrb.gmra.mxu2 %vm455_vm2, %v545_v18  ;;  %v1245_v21 = vpop.eup %1244  ;;  %v765_v18 = vperm.slane %v1515_v2, 6 }
 0x2bd   : > { %v659_v19 = vpop.permute.xlu2 %658  ;;  %v656_v22 = vmul.f32 %v1245_v21, %v1237_v62  ;;  %v1247_v48 = vpop.eup %1246 }
 0x2be   : > { %v664_v20 = vsel %vm493_vm3, %v659_v19, 0  ;;  %v731_v49 = vmul.f32 32.0, %v1247_v48  ;;  %vm735_vm6 = vweird.f32 %v1247_v48 }
 0x2bf   : > { %673 = vmatpush.bf16.msra.mxu2 %v664_v20  ;;  %v657_v23 = vpack.c.bf16 %v656_v22, %v656_v22 }
 0x2c0   : > { %v732_v50 = vsub.f32 1.0, %v731_v49 }
 0x2c2   : > { %v733_v51 = vmul.f32 %v1247_v48, %v732_v50 }
 0x2c4   : > { %v734_v52 = vadd.f32 %v1247_v48, %v733_v51 }
 0x2c6   : > { %v1558_v53 = vsel %vm735_vm6, %v1247_v48, %v734_v52 }
 0x2cc   : > { %1087 = vmatmul.msk.bf16.vlgmr.msra.gmra.mxu2 %vm455_vm2, %v657_v23 }
 0x32f   : > { %v506_v24 = vpop.f32.mrf.mxu2 }
 0x331   : > { %v619_v25 = vpop.f32.mrf.mxu1 }
 0x332   : > { %684 = vrot.lane.b32.xlu2 %v619_v25, %s1364_s9 }
 0x337   : > { %v508_v26 = vpop.f32.mrf.mxu2 }
 0x339   : > { %v621_v27 = vpop.f32.mrf.mxu1 }
 0x33f   : > { %v563_v28 = vpop.f32.mrf.mxu2 }
 0x340   : > { %680 = vrot.lane.b32.xlu1 %v563_v28, %s1365_s24 }
 0x347   : > { %v565_v29 = vpop.f32.mrf.mxu2 }
 0x34f   : > { %v675_v30 = vpop.f32.mrf.mxu2 }
 0x350   : > { %688 = vrot.lane.b32.xlu1 %v675_v30, %s1366_s26 }
 0x357   : > { %v677_v31 = vpop.f32.mrf.mxu2 }
 0x38c   : > { %v685_v36 = vpop.permute.xlu2 %684 }
 0x3b2   : > { %v681_v34 = vpop.permute.xlu1 %680 }
 0x3b3   : > { %v691_v35 = vsel %vm455_vm2, %v506_v24, %v681_v34  ;;  %v804_v24 = vperm.slane %v1515_v2, 7 }
 0x3b4   : > { %v693_v38 = vsel %vm692_vm4, %v691_v35, %v685_v36 }
 0x3c2   : > { %v689_v37 = vpop.permute.xlu1 %688 }
 0x3c3   : > { %v695_v39 = vsel %vm694_vm5, %v693_v38, %v689_v37 }
 0x3c4   : > { %v696_v40 = vpack.c.bf16 %v695_v39, %v695_v39 }
 0x3c6   : > { %1096 = vmatmul.msk.bf16.vlgmr.msra.gmra.mxu0 %vm418_vm1, %v696_v40 }
 0x443   : > { %v722_v42 = vpop.f32.mrf.mxu0 }
 0x444   : > { %v723_v43 = vadd.f32 %v722_v42, %v697_v41  ;;  %v396_v41 = vld [vmem:[%s1510_s12 + $0x8] sm:$0x3] }
 0x446   : > { %v726_v44 = vadd.f32 %v723_v43, %v1517_v4 }
 0x448   : > { %v727_v45 = vsel %vm418_vm1, %v726_v44, 0.0 }
 0x449   : > { %728 = vadd.xlane.f32.xlu2 %v727_v45 }
 0x44b   : > { %v724_v46 = vpop.f32.mrf.mxu0 }
 0x44c   : > { %v871_v46 = vperm.slane %v396_v41, 1 }
 0x4bc   : > { %v729_v54 = vpop.xlane.xlu2 %728 }
 0x4bd   : > { %v737_v4 = vmul.f32 %v1558_v53, %v729_v54 }
 0x4bf   : > { %v738_v55 = vsub.f32 %v726_v44, %v737_v4  ;;  %v869_v44 = vperm.slane %v396_v41, 0 }
 0x4c1   : > { %v739_v56 = vmul.f32 %v738_v55, %v738_v55 }
 0x4c3   : > { %v740_v57 = vsel %vm418_vm1, %v739_v56, 0.0 }
 0x4c4   : > { %741 = vadd.xlane.f32.xlu1 %v740_v57 }
 0x537   : > { %v742_v61 = vpop.xlane.xlu1 %741 }
 0x538   : > { %v743_v62 = vmul.f32 %v742_v61, %v1558_v53 }
 0x53a   : > { %v744_v0 = vadd.f32 1e-05, %v743_v62 }
 0x53c   : > { %1248 = vrsqrt.f32 %v744_v0  ;;  %vm751_vm8 = vweird.f32 %v744_v0 }
 0x542   : > { %v1249_v1 = vpop.eup %1248 }
 0x543   : > { %v746_v3 = vmul.f32 %v1249_v1, %v744_v0  ;;  %vm752_vm7 = vweird.f32 %v1249_v1 }
 0x544   : > { %vm753_vm9 = vmor %vm751_vm8, %vm752_vm7 }
 0x545   : > { %v747_v5 = vmul.f32 %v1249_v1, %v746_v3 }
 0x547   : > { %v748_v6 = vmul.f32 0.5, %v747_v5 }
 0x549   : > { %v749_v7 = vsub.f32 1.5, %v748_v6 }
 0x54b   : > { %v750_v8 = vmul.f32 %v1249_v1, %v749_v7 }
 0x54d   : > { %v754_v10 = vsel %vm753_vm9, %v1249_v1, %v750_v8 }
 0x54e   : > { %v755_v12 = vmul.f32 %v754_v10, %v738_v55 }
 0x550   : > { %v757_v13 = vmul.f32 %v756_v9, %v755_v12 }
 0x552   : > { %v759_v14 = vadd.f32 %v758_v11, %v757_v13 }
 0x554   : > { %v760_v15 = vpack.c.bf16 %v759_v14, %v759_v14 }
 0x556   : > { %1105 = vmatmul.msk.bf16.vlgmr.msra.gmra.mxu1 %vm418_vm1, %v760_v15 }
 0x5d3   : > { %v790_v19 = vpop.f32.mrf.mxu1 }
 0x5d4   : > { %v791_v20 = vadd.f32 %v790_v19, %v765_v18 }
 0x5d6   : > { %v794_v21 = vmax.f32 %v791_v20, 0.0 }
 0x5d8   : > { %v795_v22 = vpack.c.bf16 %v794_v21, %v794_v21 }
 0x5da   : > { %1122 = vmatmul.msk.bf16.vlgmr.msra.gmra.mxu3 %vm829_vm10, %v795_v22 }
 0x5db   : > { %v792_v23 = vpop.f32.mrf.mxu1 }
 0x65d   : > { %v842_v25 = vpop.f32.mrf.mxu3 }
 0x65e   : > { %v843_v26 = vadd.f32 %v842_v25, %v804_v24 }
 0x660   : > { %v846_v27 = vadd.f32 %v843_v26, %v759_v14 }
 0x662   : > { %v847_v28 = vsel %vm418_vm1, %v846_v27, 0.0 }
 0x663   : > { %848 = vadd.xlane.f32.xlu0 %v847_v28 }
 0x665   : > { %v844_v29 = vpop.f32.mrf.mxu3 }
 0x6d6   : > { %v849_v30 = vpop.xlane.xlu0 %848 }
 0x6d7   : > { %v850_v31 = vmul.f32 %v849_v30, %v1558_v53 }
 0x6d9   : > { %v851_v32 = vsub.f32 %v846_v27, %v850_v31 }
 0x6db   : > { %v852_v33 = vmul.f32 %v851_v32, %v851_v32 }
 0x6dd   : > { %v853_v34 = vsel %vm418_vm1, %v852_v33, 0.0 }
 0x6de   : > { %854 = vadd.xlane.f32.xlu0 %v853_v34 }
 0x751   : > { %v855_v35 = vpop.xlane.xlu0 %854 }
 0x752   : > { %v856_v36 = vmul.f32 %v855_v35, %v1558_v53 }
 0x754   : > { %v857_v2 = vadd.f32 1e-05, %v856_v36 }
 0x756   : > { %1250 = vrsqrt.f32 %v857_v2  ;;  %vm864_vm12 = vweird.f32 %v857_v2 }
 0x75c   : > { %v1251_v37 = vpop.eup %1250 }
 0x75d   : > { %v859_v38 = vmul.f32 %v1251_v37, %v857_v2  ;;  %vm865_vm11 = vweird.f32 %v1251_v37 }
 0x75e   : > { %vm866_vm13 = vmor %vm864_vm12, %vm865_vm11 }
 0x75f   : > { %v860_v39 = vmul.f32 %v1251_v37, %v859_v38 }
 0x761   : > { %v861_v40 = vmul.f32 0.5, %v860_v39 }
 0x763   : > { %v862_v42 = vsub.f32 1.5, %v861_v40 }
 0x765   : > { %v863_v43 = vmul.f32 %v1251_v37, %v862_v42 }
 0x767   : > { %v867_v45 = vsel %vm866_vm13, %v1251_v37, %v863_v43 }
 0x768   : > { %v868_v47 = vmul.f32 %v867_v45, %v851_v32 }
 0x76a   : > { %v870_v48 = vmul.f32 %v869_v44, %v868_v47  ;;  %877 = sbr.rel (%p1123_p1) target bundleno = 2172 (0x87c), region = 56 }
 0x76c   : > { %v872_v49 = vadd.f32 %v871_v46, %v870_v48 }
 0x76e   : > { %873 = vst.msk [vmem:[#allocation2] sm:$0xff] %vm418_vm1, %v872_v49 }
 0x76f   : > { %v878_v50 = vsel %vm418_vm1, %v872_v49, 0.0  ;;  %v1252_v1 = vld [vmem:[%s1646_s6] ss:$0 sm:$0xff] }
 0x770   : > { %879 = vadd.xlane.f32.xlu0 %v878_v50 }
 0x7e3   : > { %v880_v51 = vpop.xlane.xlu0 %879 }
 0x7e4   : > { %v881_v52 = vmul.f32 %v880_v51, %v1558_v53 }
 0x7e6   : > { %v882_v54 = vsub.f32 %v872_v49, %v881_v52 }
 0x7e8   : > { %v883_v4 = vmul.f32 %v882_v54, %v882_v54 }
 0x7ea   : > { %v884_v55 = vsel %vm418_vm1, %v883_v4, 0.0 }
 0x7eb   : > { %885 = vadd.xlane.f32.xlu0 %v884_v55 }
 0x85e   : > { %v886_v56 = vpop.xlane.xlu0 %885 }
 0x85f   : > { %v887_v57 = vmul.f32 %v886_v56, %v1558_v53  ;;  %v1253_v53 = vld [vmem:[%s1646_s6 + $0x1] ss:$0 sm:$0xff] }
 0x861   : > { %v888_v58 = vadd.f32 1e-05, %v887_v57 }
 0x863   : > { %1254 = vrsqrt.f32 %v888_v58  ;;  %vm895_vm15 = vweird.f32 %v888_v58 }
 0x869   : > { %v1255_v59 = vpop.eup %1254 }
 0x86a   : > { %v890_v60 = vmul.f32 %v1255_v59, %v888_v58  ;;  %vm896_vm14 = vweird.f32 %v1255_v59 }
 0x86b   : > { %vm897_vm0 = vmor %vm895_vm15, %vm896_vm14 }
 0x86c   : > { %v891_v61 = vmul.f32 %v1255_v59, %v890_v60 }
 0x86e   : > { %v892_v62 = vmul.f32 0.5, %v891_v61 }
 0x870   : > { %v893_v63 = vsub.f32 1.5, %v892_v62 }
 0x872   : > { %v894_v0 = vmul.f32 %v1255_v59, %v893_v63 }
 0x874   : > { %v898_v3 = vsel %vm897_vm0, %v1255_v59, %v894_v0 }
 0x875   : > { %v899_v5 = vmul.f32 %v898_v3, %v882_v54 }
 0x877   : > { %v902_v6 = vmul.f32 %v1252_v1, %v899_v5 }
 0x879   : > { %v905_v7 = vadd.f32 %v1253_v53, %v902_v6 }
 0x87b   : > { %906 = vst.msk [vmem:[%s356_s16] sm:$0xff] %vm418_vm1, %v905_v7 }
 0x87c PF: > { %s1125_s12 = sshll.u32 %s1338_s28, 3  ;;  %s920_s11 = sshll.u32 %s356_s16, 4  ;;  %s921_s11 = int_to_ptr.vmem [resolvable:$true] %s920_s11 }
 0x87d   : > { %s918_s8 = scalar_lea.hbm %s1647_s7, %s1125_s12  ;;  %s1668_s21 = sand.u32 1, %s1326_s25  }
 0x87e   : > { %s922_s18 = sshll.u32 %s918_s8, 4  ;;  %s908_s10 = scalar_lea.sflag [#allocation4], %s1668_s21  ;;  %s923_s18 = int_to_ptr.hbm [resolvable:$true] %s922_s18 }
 0x87f   : > { %s1270_s15 = sshra.s32 %s923_s18, 4  ;;  %s1276_s9 = scalar_lea.hbm %s1647_s7, 16  ;;  %s1271_s15 = int_to_ptr.hbm [resolvable:$true] %s1270_s15 }
 0x880   : > { %s1272_s20 = scalar_lea.hbm %s1271_s15, 8  ;;  %p1277_p6 = scmp.lt.s32.totalorder %s1271_s15, %s1647_s7 }
 0x881   : > { %p1273_p2 = scmp.ne.s32.totalorder %s1271_s15, %s1272_s20  ;;  %p1278_p7 = scmp.lt.s32.totalorder %s1276_s9, %s1272_s20 }
 0x883   : > { %p1274_p4 = pnand %p1273_p2, %p1457_p3  ;;  %p1279_p8 = por %p1278_p7, %p1277_p6 }
 0x885   : > { %p1275_p5 = pneg %p1274_p4 }
 0x887   : > { %p1280_p10 = pnand %p1279_p8, %p1275_p5 }
 0x889   : > { %1283 = shalt.err (!%p1280_p10)
}
 0x88a   : > { %1143 = dma.vmem_to_hbm [thread:$0]  (%p1457_p3), %s921_s11, 128, %s923_s18, %s908_s10  }
 0x88b PF: > { %s1669_s19 = sld [smem:[#allocation10_spill]] }
 0x88c   : > { %s1670_s16 = sld [smem:[#allocation6_spill]] }
 0x891   : > { %p1149_p11 = scmp.ge.s32.totalorder %s1669_s19, 2 }
 0x892   : > { %s934_s14 = sand.u32 1, %s1670_s16  }
 0x893   : > { %p1146_p12 = pnand %p1149_p11, %p1467_p9  ;;  %s935_s17 = scalar_lea.sflag [#allocation4], %s934_s14 }
 0x895   : > { %p1147_p13 = pneg %p1146_p12 }
 0x897   : > { %1317 = dma.done.wait (%p1147_p13), %s935_s17, 128  }
 0x898   : > { %1319 = vsyncadd (%p1147_p13), %s935_s17, 4294967168  ;;  %s20_s8 = sadd.s32 1, %s1669_s19   ;;  %s1672_s22 = sld [smem:[#allocation7_spill]] }
 0x899   : > { %p17_p0 = scmp.ge.s32.totalorder %s20_s8, 6   ;;  %s1673_s26 = sld [smem:[#allocation14_spill]] }
 0x89a   : > { %s1674_s27 = sld [smem:[#allocation8_spill]]  ;;  %s1678_s24 = smov %s1326_s25 }
 0x89b   : > { %s1675_s28 = sld [smem:[#allocation9_spill]]  ;;  %19 = sbr.rel (!%p17_p0) target bundleno = 5 (0x5), region = 106 }
 0x89c   : > { %s1676_s29 = sld [smem:[#allocation11_spill]] }
 0x89d   : > { %s1677_s30 = sld [smem:[#allocation12_spill]] }
 0x89e   : > { %s1679_s25 = smov %s1672_s22 }
 0x8a0   :  { %941 = vsyncpa [#allocation4], 1 }
 0x8a1   :  { %943 = vsyncpa [#allocation4 + $0x1], 1 }

</bundles_post_ra>
